<compile_context>
chip_gen: v5e
topology: v5e:2x2
jax: 0.10.0
libtpu: 0.0.40
codegen_flags: <defaults>
</compile_context>

<pallas_src>
import jax
import jax.numpy as jnp
from jax.experimental import pallas as pl
from jax.experimental.pallas import tpu as pltpu


# ---------------- helpers ----------------

def _round_up(n, m):
    return ((n + m - 1) // m) * m


def _bucket_nodes(n):
    # Bucket node counts to powers of two (>=8): tiny graphs stay 8-row
    # (sublane) padded, larger graphs land on multiples of 128 (lane-dense A),
    # and the small set of buckets keeps Mosaic compiles cached.
    return max(8, int(pl.next_power_of_2(int(n))))


_SUBGRAPH_BATCH = 8                    # B subgraphs / grid step -> (8,128) output tile
_VMEM_LIMIT = 48 * 1024 * 1024         # explicit scoped-VMEM limit (fits v7x 64 MiB)


# ---------------- Pallas kernels (hot path) ----------------

def _subgraph_batched_kernel(a_ref, x_ref, w_ref, b_ref, o_ref):
    """One grid step = B subgraphs: GCNConv (sym-norm) + ReLU + mean-pool."""
    a = a_ref[...]                                    # (B, N, N) bf16, A+I
    x = x_ref[...]                                    # (B, N, F) bf16
    w = w_ref[...]                                    # (F, H)    bf16
    b = b_ref[...][None]                              # (1, 1, H) f32

    bsz, n_pad, f_pad = x.shape
    h_pad = w.shape[1]

    # deg = row-sums of A+I; padded rows / padded subgraph slots are all-zero.
    deg = jnp.sum(a.astype(jnp.float32), axis=2, keepdims=True)      # (B, N, 1)
    valid = (deg > 0.0).astype(jnp.float32)
    dinv = jnp.where(deg > 0.0, jax.lax.rsqrt(deg), 0.0)             # EUP rsqrt

    # XW on the MXU: bf16 operands, f32 accumulation.
    xw = jnp.dot(x.reshape(bsz * n_pad, f_pad), w,
                 preferred_element_type=jnp.float32).reshape(bsz, n_pad, h_pad)
    xw = (dinv * xw).astype(jnp.bfloat16)
    # D^-1/2 (A+I) D^-1/2 XW  ==  dinv * (A @ (dinv * XW))  -> no transpose
    ax = jnp.einsum('bij,bjh->bih', a, xw, preferred_element_type=jnp.float32)
    h = dinv * ax + b
    h = jnp.maximum(h, 0.0) * valid                                   # ReLU, mask pads

    cnt = jnp.maximum(jnp.sum(valid, axis=1), 1.0)                    # (B, 1)
    o_ref[...] = jnp.sum(h, axis=1) * pl.reciprocal(cnt, approx=True)


def _global_tiled_kernel(a_ref, x_ref, dinv_ref, wg_ref, bg_ref, wf_ref, bf_ref,
                         o_ref, acc_ref, cnt_ref):
    """Row-tiled fused global branch: GCNConv + ReLU + mean-pool + fc Linear."""
    i = pl.program_id(0)

    @pl.when(i == 0)
    def _():
        acc_ref[...] = jnp.zeros_like(acc_ref)
        cnt_ref[...] = jnp.zeros_like(cnt_ref)

    a = a_ref[...]                                    # (tm, N) bf16 row tile of A+I
    deg = jnp.sum(a.astype(jnp.float32), axis=1, keepdims=True)       # (tm, 1)
    valid = (deg > 0.0).astype(jnp.float32)
    dinv_rows = jnp.where(deg > 0.0, jax.lax.rsqrt(deg), 0.0)

    # Column-side D^-1/2 scaling uses the full-graph dinv vector (resident input).
    xs = (dinv_ref[...] * x_ref[...].astype(jnp.float32)).astype(jnp.bfloat16)
    ax = jnp.dot(a, xs, preferred_element_type=jnp.float32)           # (tm, F)
    ax = (dinv_rows * ax).astype(jnp.bfloat16)
    h = jnp.dot(ax, wg_ref[...], preferred_element_type=jnp.float32) + bg_ref[...]
    h = jnp.maximum(h, 0.0) * valid

    acc_ref[...] += jnp.sum(h, axis=0, keepdims=True)                 # (1, H)
    cnt_ref[...] += jnp.sum(valid, axis=0, keepdims=True)             # (1, 1)

    @pl.when(i == pl.num_programs(0) - 1)
    def _():
        cnt = jnp.maximum(cnt_ref[...], 1.0)
        pooled = acc_ref[...] * pl.reciprocal(cnt, approx=True)       # (1, H)
        o_ref[...] = (jnp.dot(pooled.astype(jnp.bfloat16), wf_ref[...],
                              preferred_element_type=jnp.float32) + bf_ref[...])


# ---------------- pallas_call wrappers ----------------

def subgraph_gcn_pool_batched(a_stack, x_stack, w_sub, b_sub):
    """All subgraphs in one gridded call (B per step). Returns (S_pad, H_pad)."""
    s_pad, n_pad, _ = a_stack.shape
    f_pad, h_pad = w_sub.shape
    bsz = _SUBGRAPH_BATCH
    return pl.pallas_call(
        _subgraph_batched_kernel,
        out_shape=jax.ShapeDtypeStruct((s_pad, h_pad), jnp.float32),
        grid_spec=pltpu.PrefetchScalarGridSpec(
            num_scalar_prefetch=0,
            grid=(s_pad // bsz,),
            in_specs=[
                pl.BlockSpec((bsz, n_pad, n_pad), lambda i: (i, 0, 0)),
                pl.BlockSpec((bsz, n_pad, f_pad), lambda i: (i, 0, 0)),
                pl.BlockSpec((f_pad, h_pad), lambda i: (0, 0)),
                pl.BlockSpec((1, h_pad), lambda i: (0, 0)),
            ],
            out_specs=pl.BlockSpec((bsz, h_pad), lambda i: (i, 0)),
        ),
        compiler_params=pltpu.CompilerParams(
            dimension_semantics=("parallel",),      # v7x: shard steps over 2 TCs
            vmem_limit_bytes=_VMEM_LIMIT),
    )(a_stack, x_stack, w_sub, b_sub)


def global_gcn_pool_fc(a, x, dinv, w_glob, b_glob, w_fc, b_fc):
    """Fused global branch, row-tiled over A. Returns (1, H_pad)."""
    n_pad = a.shape[0]
    f_pad = x.shape[1]
    h_pad = w_fc.shape[1]
    tm = n_pad if n_pad <= 512 else 512             # n_pad is a power of 2 -> divides
    return pl.pallas_call(
        _global_tiled_kernel,
        out_shape=jax.ShapeDtypeStruct((1, h_pad), jnp.float32),
        grid_spec=pltpu.PrefetchScalarGridSpec(
            num_scalar_prefetch=0,
            grid=(n_pad // tm,),
            in_specs=[
                pl.BlockSpec((tm, n_pad), lambda i: (i, 0)),      # A row tile
                pl.BlockSpec((n_pad, f_pad), lambda i: (0, 0)),   # X (resident)
                pl.BlockSpec((n_pad, 1), lambda i: (0, 0)),       # dinv (resident)
                pl.BlockSpec((f_pad, h_pad), lambda i: (0, 0)),
                pl.BlockSpec((1, h_pad), lambda i: (0, 0)),
                pl.BlockSpec((h_pad, h_pad), lambda i: (0, 0)),
                pl.BlockSpec((1, h_pad), lambda i: (0, 0)),
            ],
            out_specs=pl.BlockSpec((1, h_pad), lambda i: (0, 0)),
            scratch_shapes=[pltpu.VMEM((1, h_pad), jnp.float32),
                            pltpu.VMEM((1, 1), jnp.float32)],
        ),
        compiler_params=pltpu.CompilerParams(
            dimension_semantics=("arbitrary",),     # output accumulates across tiles
            vmem_limit_bytes=_VMEM_LIMIT),
    )(a, x, dinv, w_glob, b_glob, w_fc, b_fc)


# ---------------- plain-JAX glue ----------------

def build_global_adj(edge_index, num_nodes, n_pad):
    """Zero-padded A+I (self loops on real nodes only) in bf16 + f32 D^-1/2."""
    # TODO(synk): dense adjacency from sparse edge_index is a plain-JAX scatter;
    # a sparse gather/scatter message-passing kernel is out of scope here.
    src = edge_index[0].astype(jnp.int32)
    dst = edge_index[1].astype(jnp.int32)
    a = jnp.zeros((n_pad, n_pad), jnp.float32).at[dst, src].add(1.0)
    a = a + jnp.diag((jnp.arange(n_pad) < num_nodes).astype(jnp.float32))
    deg = jnp.sum(a, axis=1, keepdims=True)
    dinv = jnp.where(deg > 0.0, jax.lax.rsqrt(deg), 0.0)
    return a.astype(jnp.bfloat16), dinv


def build_subgraph_batch(subgraph_data_list, s_pad, n_pad, f_pad):
    """All subgraph A+I matrices via ONE batched scatter; padded, stacked, bf16."""
    s = len(subgraph_data_list)
    sub_ids, srcs, dsts = [], [], []
    for i, sub in enumerate(subgraph_data_list):
        e = sub["edge_index"]
        sub_ids.append(jnp.full((e.shape[1],), i, jnp.int32))
        srcs.append(e[0].astype(jnp.int32))
        dsts.append(e[1].astype(jnp.int32))
    sub_ids = jnp.concatenate(sub_ids)
    srcs = jnp.concatenate(srcs)
    dsts = jnp.concatenate(dsts)

    num_nodes = jnp.zeros((s_pad,), jnp.int32).at[:s].set(
        jnp.array([sub["x"].shape[0] for sub in subgraph_data_list], jnp.int32))

    a = jnp.zeros((s_pad, n_pad, n_pad), jnp.float32).at[sub_ids, dsts, srcs].add(1.0)
    node_valid = (jnp.arange(n_pad)[None, :] < num_nodes[:, None]).astype(jnp.float32)
    a = a + node_valid[:, :, None] * jnp.eye(n_pad, dtype=jnp.float32)[None]

    x = jnp.zeros((s_pad, n_pad, f_pad), jnp.bfloat16)
    for i, sub in enumerate(subgraph_data_list):
        n, f = sub["x"].shape
        x = x.at[i, :n, :f].set(sub["x"].astype(jnp.bfloat16))
    return a.astype(jnp.bfloat16), x


class GCNWithSubgraphsPallas:
    def __init__(self, in_channels, hidden_channels, key):
        self.in_channels = in_channels
        self.hidden_channels = hidden_channels
        self.f_pad = _round_up(in_channels, 128)
        self.h_pad = _round_up(hidden_channels, 128)

        k1, k2, k3, k4, k5, k6 = jax.random.split(key, 6)
        s_in = 1.0 / jnp.sqrt(jnp.float32(in_channels))
        s_h = 1.0 / jnp.sqrt(jnp.float32(hidden_channels))

        def pad_w(k, rows, cols, scale, r_pad, c_pad):
            w = jax.random.normal(k, (rows, cols), jnp.float32) * scale
            w = jnp.zeros((r_pad, c_pad), jnp.float32).at[:rows, :cols].set(w)
            return w.astype(jnp.bfloat16)          # MXU operand dtype

        def pad_b(k, cols, scale, c_pad):
            b = jax.random.normal(k, (cols,), jnp.float32) * scale
            return jnp.zeros((1, c_pad), jnp.float32).at[0, :cols].set(b)

        # Pre-padded, pre-cast (bf16 weights / f32 biases), shaped once.
        self.w_sub = pad_w(k1, in_channels, hidden_channels, s_in, self.f_pad, self.h_pad)
        self.b_sub = pad_b(k2, hidden_channels, s_in, self.h_pad)
        self.w_glob = pad_w(k3, in_channels, hidden_channels, s_in, self.f_pad, self.h_pad)
        self.b_glob = pad_b(k4, hidden_channels, s_in, self.h_pad)
        self.w_fc = pad_w(k5, hidden_channels, hidden_channels, s_h, self.h_pad, self.h_pad)
        self.b_fc = pad_b(k6, hidden_channels, s_h, self.h_pad)

    def __call__(self, subgraph_data_list, global_x, global_edge_index, global_batch):
        in_c = self.in_channels

        # --- subgraph branch: one batched/gridded pallas_call + one scatter-add ---
        if subgraph_data_list:
            s = len(subgraph_data_list)
            n_max = max(int(sub["x"].shape[0]) for sub in subgraph_data_list)
            n_pad = _bucket_nodes(n_max)
            # Power-of-two grid length -> few distinct (grid, n_pad) compiles.
            # TODO(synk): with B=8 and few subgraphs the grid has one step, so the
            # second v7x TensorCore idles; shrink _SUBGRAPH_BATCH for many-tiny-
            # subgraph workloads if megacore sharding matters more than store shape.
            n_steps = max(1, int(pl.next_power_of_2(int(pl.cdiv(s, _SUBGRAPH_BATCH)))))
            s_pad = n_steps * _SUBGRAPH_BATCH

            a_stack, x_stack = build_subgraph_batch(
                subgraph_data_list, s_pad, n_pad, self.f_pad)
            idx = jnp.array([int(sub["index"]) - 1 for sub in subgraph_data_list],
                            dtype=jnp.int32)

            pooled = subgraph_gcn_pool_batched(
                a_stack, x_stack, self.w_sub, self.b_sub)            # (S_pad, H_pad)

            # TODO(synk): like the PyTorch module, this add requires
            # hidden_channels == in_channels; duplicate indices accumulate,
            # matching the sequential-loop semantics of the reference.
            assert self.hidden_channels == in_c, (
                "subgraph accumulation requires hidden_channels == in_channels")
            global_x = global_x.at[idx].add(pooled[:s, :in_c])

        # --- global branch: row-tiled fused GCN + ReLU + mean-pool + fc ---
        n = global_x.shape[0]
        n_pad = _bucket_nodes(n)
        a_glob, dinv = build_global_adj(global_edge_index, n, n_pad)
        x_pad = jnp.zeros((n_pad, self.f_pad), jnp.bfloat16).at[:n, :in_c].set(
            global_x.astype(jnp.bfloat16))
        # TODO(synk): global_mean_pool assumes a single graph (batch == 0 everywhere),
        # matching the provided example; general segment-mean pooling over arbitrary
        # batch vectors is not implemented in-kernel.
        out_pad = global_gcn_pool_fc(a_glob, x_pad, dinv, self.w_glob, self.b_glob,
                                     self.w_fc, self.b_fc)           # (1, H_pad)
        return out_pad[:, :self.hidden_channels]


if __name__ == "__main__":
    key = jax.random.PRNGKey(0)
    k_feat, k_model, k_s1, k_s2 = jax.random.split(key, 4)

    # Global graph: 8 nodes in a path, bidirectional edges, 3 input features.
    global_edge_index = jnp.array(
        [[0, 1, 1, 2, 2, 3, 3, 4, 4, 5, 5, 6, 6, 7],
         [1, 0, 2, 1, 3, 2, 4, 3, 5, 4, 6, 5, 7, 6]], dtype=jnp.int32)
    global_x = jax.random.normal(k_feat, (8, 3), jnp.float32)
    global_batch = jnp.zeros((8,), jnp.int32)

    model = GCNWithSubgraphsPallas(in_channels=3, hidden_channels=3, key=k_model)

    # Case 1: matches the reference example (empty subgraph list).
    out = model([], global_x, global_edge_index, global_batch)
    out = jax.block_until_ready(out)
    assert out.shape == (1, 3)
    assert bool(jnp.all(jnp.isfinite(out)))

    # Case 2: also exercise the batched subgraph kernel path.
    subgraph_data_list = [
        {"x": jax.random.normal(k_s1, (4, 3), jnp.float32),
         "edge_index": jnp.array([[0, 1, 1, 2, 2, 3],
                                  [1, 0, 2, 1, 3, 2]], dtype=jnp.int32),
         "index": 2},
        {"x": jax.random.normal(k_s2, (5, 3), jnp.float32),
         "edge_index": jnp.array([[0, 1, 1, 2, 3, 4],
                                  [1, 0, 2, 1, 4, 3]], dtype=jnp.int32),
         "index": 5},
    ]
    out2 = model(subgraph_data_list, global_x, global_edge_index, global_batch)
    out2 = jax.block_until_ready(out2)
    assert out2.shape == (1, 3)
    assert bool(jnp.all(jnp.isfinite(out2)))

    print("KERNEL_OK")
</pallas_src>

<mosaic_0001>
module attributes {stable_mosaic.version = 11 : i64} {
  func.func @_global_tiled_kernel(%arg0: i32, %arg1: memref<8x8xbf16, #tpu.memory_space<vmem>>, %arg2: memref<8x128xbf16, #tpu.memory_space<vmem>>, %arg3: memref<8x1xf32, #tpu.memory_space<vmem>>, %arg4: memref<128x128xbf16, #tpu.memory_space<vmem>>, %arg5: memref<1x128xf32, #tpu.memory_space<vmem>>, %arg6: memref<128x128xbf16, #tpu.memory_space<vmem>>, %arg7: memref<1x128xf32, #tpu.memory_space<vmem>>, %arg8: memref<1x128xf32, #tpu.memory_space<vmem>>, %arg9: memref<1x128xf32, #tpu.memory_space<vmem>>, %arg10: memref<1x1xf32, #tpu.memory_space<vmem>>) attributes {dimension_semantics = [#tpu.dimension_semantics<arbitrary>], iteration_bounds = array<i64: 1>, scalar_prefetch = 0 : i64, scratch_operands = 2 : i64, tpu.core_type = #tpu.core_type<tc>, window_params = [{transform_indices = @transform_0, window_bounds = array<i64: 8, 8>}, {pipeline_mode = #tpu.pipeline_mode<synchronous>, transform_indices = @transform_1, window_bounds = array<i64: 8, 128>}, {pipeline_mode = #tpu.pipeline_mode<synchronous>, transform_indices = @transform_2, window_bounds = array<i64: 8, 1>}, {pipeline_mode = #tpu.pipeline_mode<synchronous>, transform_indices = @transform_3, window_bounds = array<i64: 128, 128>}, {pipeline_mode = #tpu.pipeline_mode<synchronous>, transform_indices = @transform_4, window_bounds = array<i64: 1, 128>}, {pipeline_mode = #tpu.pipeline_mode<synchronous>, transform_indices = @transform_5, window_bounds = array<i64: 128, 128>}, {pipeline_mode = #tpu.pipeline_mode<synchronous>, transform_indices = @transform_6, window_bounds = array<i64: 1, 128>}, {pipeline_mode = #tpu.pipeline_mode<synchronous>, transform_indices = @transform_7, window_bounds = array<i64: 1, 128>}]} {
    %c0_i32 = arith.constant 0 : i32
    %0 = arith.cmpi eq, %arg0, %c0_i32 : i32
    %1 = arith.extui %0 : i1 to i32
    %c0_i32_0 = arith.constant 0 : i32
    %2 = arith.cmpi ne, %1, %c0_i32_0 : i32
    scf.if %2 {
      %cst_28 = arith.constant 0.000000e+00 : f32
      %48 = vector.broadcast %cst_28 : f32 to vector<1x128xf32>
      %c0_29 = arith.constant 0 : index
      %c0_30 = arith.constant 0 : index
      %49 = vector.load %arg9[%c0_29, %c0_30] : memref<1x128xf32, #tpu.memory_space<vmem>>, vector<1x128xf32>
      tpu.vector_store %arg9[%c0_29, %c0_30], %48 {strides = array<i32>} : memref<1x128xf32, #tpu.memory_space<vmem>>, vector<1x128xf32>,
      %cst_31 = arith.constant 0.000000e+00 : f32
      %50 = vector.broadcast %cst_31 : f32 to vector<1x1xf32>
      %c0_32 = arith.constant 0 : index
      %c0_33 = arith.constant 0 : index
      %51 = vector.load %arg10[%c0_32, %c0_33] : memref<1x1xf32, #tpu.memory_space<vmem>>, vector<1x1xf32>
      tpu.vector_store %arg10[%c0_32, %c0_33], %50 {strides = array<i32>} : memref<1x1xf32, #tpu.memory_space<vmem>>, vector<1x1xf32>,
    } else {
    }
    %c0 = arith.constant 0 : index
    %c0_1 = arith.constant 0 : index
    %3 = vector.load %arg1[%c0, %c0_1] : memref<8x8xbf16, #tpu.memory_space<vmem>>, vector<8x8xbf16>
    %4 = arith.extf %3 : vector<8x8xbf16> to vector<8x8xf32>
    %cst = arith.constant dense<0.000000e+00> : vector<8xf32>
    %5 = vector.multi_reduction <add>, %4, %cst [1] : vector<8x8xf32> to vector<8xf32>
    %6 = vector.shape_cast %5 : vector<8xf32> to vector<8x1xf32>
    %cst_2 = arith.constant 0.000000e+00 : f32
    %7 = vector.broadcast %cst_2 : f32 to vector<8x1xf32>
    %8 = arith.cmpf ogt, %6, %7 : vector<8x1xf32>
    %9 = arith.extui %8 : vector<8x1xi1> to vector<8x1xi32>
    %10 = arith.sitofp %9 : vector<8x1xi32> to vector<8x1xf32>
    %cst_3 = arith.constant 0.000000e+00 : f32
    %11 = vector.broadcast %cst_3 : f32 to vector<8x1xf32>
    %12 = arith.cmpf ogt, %6, %11 : vector<8x1xf32>
    %13 = math.rsqrt %6 : vector<8x1xf32>
    %cst_4 = arith.constant 0.000000e+00 : f32
    %14 = vector.broadcast %cst_4 : f32 to vector<8x1xf32>
    %15 = arith.select %12, %13, %14 : vector<8x1xi1>, vector<8x1xf32>
    %c0_5 = arith.constant 0 : index
    %c0_6 = arith.constant 0 : index
    %16 = vector.load %arg3[%c0_5, %c0_6] : memref<8x1xf32, #tpu.memory_space<vmem>>, vector<8x1xf32>
    %c0_7 = arith.constant 0 : index
    %c0_8 = arith.constant 0 : index
    %17 = vector.load %arg2[%c0_7, %c0_8] : memref<8x128xbf16, #tpu.memory_space<vmem>>, vector<8x128xbf16>
    %18 = arith.extf %17 : vector<8x128xbf16> to vector<8x128xf32>
    %19 = vector.broadcast %16 : vector<8x1xf32> to vector<8x128xf32>
    %20 = arith.mulf %19, %18 : vector<8x128xf32>
    %21 = arith.truncf %20 : vector<8x128xf32> to vector<8x128xbf16>
    %cst_9 = arith.constant dense<0.000000e+00> : vector<8x128xf32>
    %22 = tpu.matmul %3, %21, %cst_9 {dimension_numbers = #tpu.dot_dimension_numbers<[1], [0], [0], [1], [0, 0, 1, 1], [], []>} : vector<8x8xbf16>, vector<8x128xbf16>, vector<8x128xf32> -> vector<8x128xf32>
    %23 = vector.broadcast %15 : vector<8x1xf32> to vector<8x128xf32>
    %24 = arith.mulf %23, %22 : vector<8x128xf32>
    %25 = arith.truncf %24 : vector<8x128xf32> to vector<8x128xbf16>
    %c0_10 = arith.constant 0 : index
    %c0_11 = arith.constant 0 : index
    %26 = vector.load %arg4[%c0_10, %c0_11] : memref<128x128xbf16, #tpu.memory_space<vmem>>, vector<128x128xbf16>
    %cst_12 = arith.constant dense<0.000000e+00> : vector<8x128xf32>
    %27 = tpu.matmul %25, %26, %cst_12 {dimension_numbers = #tpu.dot_dimension_numbers<[1], [0], [0], [1], [0, 0, 1, 1], [], []>} : vector<8x128xbf16>, vector<128x128xbf16>, vector<8x128xf32> -> vector<8x128xf32>
    %c0_13 = arith.constant 0 : index
    %c0_14 = arith.constant 0 : index
    %28 = vector.load %arg5[%c0_13, %c0_14] : memref<1x128xf32, #tpu.memory_space<vmem>>, vector<1x128xf32>
    %29 = vector.broadcast %28 : vector<1x128xf32> to vector<8x128xf32>
    %30 = arith.addf %27, %29 : vector<8x128xf32>
    %cst_15 = arith.constant 0.000000e+00 : f32
    %31 = vector.broadcast %cst_15 : f32 to vector<8x128xf32>
    %32 = arith.maximumf %30, %31 : vector<8x128xf32>
    %33 = vector.broadcast %10 : vector<8x1xf32> to vector<8x128xf32>
    %34 = arith.mulf %32, %33 : vector<8x128xf32>
    %c0_16 = arith.constant 0 : index
    %c0_17 = arith.constant 0 : index
    %35 = vector.load %arg9[%c0_16, %c0_17] : memref<1x128xf32, #tpu.memory_space<vmem>>, vector<1x128xf32>
    %cst_18 = arith.constant dense<0.000000e+00> : vector<128xf32>
    %36 = vector.multi_reduction <add>, %34, %cst_18 [0] : vector<8x128xf32> to vector<128xf32>
    %37 = vector.shape_cast %36 : vector<128xf32> to vector<1x128xf32>
    %38 = arith.addf %35, %37 : vector<1x128xf32>
    %c0_19 = arith.constant 0 : index
    %c0_20 = arith.constant 0 : index
    %39 = vector.load %arg9[%c0_19, %c0_20] : memref<1x128xf32, #tpu.memory_space<vmem>>, vector<1x128xf32>
    tpu.vector_store %arg9[%c0_19, %c0_20], %38 {strides = array<i32>} : memref<1x128xf32, #tpu.memory_space<vmem>>, vector<1x128xf32>,
    %c0_21 = arith.constant 0 : index
    %c0_22 = arith.constant 0 : index
    %40 = vector.load %arg10[%c0_21, %c0_22] : memref<1x1xf32, #tpu.memory_space<vmem>>, vector<1x1xf32>
    %cst_23 = arith.constant dense<0.000000e+00> : vector<1xf32>
    %41 = vector.multi_reduction <add>, %10, %cst_23 [0] : vector<8x1xf32> to vector<1xf32>
    %42 = vector.shape_cast %41 : vector<1xf32> to vector<1x1xf32>
    %43 = arith.addf %40, %42 : vector<1x1xf32>
    %c0_24 = arith.constant 0 : index
    %c0_25 = arith.constant 0 : index
    %44 = vector.load %arg10[%c0_24, %c0_25] : memref<1x1xf32, #tpu.memory_space<vmem>>, vector<1x1xf32>
    tpu.vector_store %arg10[%c0_24, %c0_25], %43 {strides = array<i32>} : memref<1x1xf32, #tpu.memory_space<vmem>>, vector<1x1xf32>,
    %c0_i32_26 = arith.constant 0 : i32
    %45 = arith.cmpi eq, %arg0, %c0_i32_26 : i32
    %46 = arith.extui %45 : i1 to i32
    %c0_i32_27 = arith.constant 0 : i32
    %47 = arith.cmpi ne, %46, %c0_i32_27 : i32
    scf.if %47 {
      %c0_28 = arith.constant 0 : index
      %c0_29 = arith.constant 0 : index
      %48 = vector.load %arg10[%c0_28, %c0_29] : memref<1x1xf32, #tpu.memory_space<vmem>>, vector<1x1xf32>
      %cst_30 = arith.constant 1.000000e+00 : f32
      %49 = vector.broadcast %cst_30 : f32 to vector<1x1xf32>
      %50 = arith.maximumf %48, %49 : vector<1x1xf32>
      %c0_31 = arith.constant 0 : index
      %c0_32 = arith.constant 0 : index
      %51 = vector.load %arg9[%c0_31, %c0_32] : memref<1x128xf32, #tpu.memory_space<vmem>>, vector<1x128xf32>
      %52 = tpu.reciprocal %50 {approx = true} : vector<1x1xf32> -> vector<1x1xf32>
      %53 = vector.broadcast %52 : vector<1x1xf32> to vector<1x128xf32>
      %54 = arith.mulf %51, %53 : vector<1x128xf32>
      %55 = arith.truncf %54 : vector<1x128xf32> to vector<1x128xbf16>
      %c0_33 = arith.constant 0 : index
      %c0_34 = arith.constant 0 : index
      %56 = vector.load %arg6[%c0_33, %c0_34] : memref<128x128xbf16, #tpu.memory_space<vmem>>, vector<128x128xbf16>
      %cst_35 = arith.constant dense<0.000000e+00> : vector<1x128xf32>
      %57 = tpu.matmul %55, %56, %cst_35 {dimension_numbers = #tpu.dot_dimension_numbers<[1], [0], [0], [1], [0, 0, 1, 1], [], []>} : vector<1x128xbf16>, vector<128x128xbf16>, vector<1x128xf32> -> vector<1x128xf32>
      %c0_36 = arith.constant 0 : index
      %c0_37 = arith.constant 0 : index
      %58 = vector.load %arg7[%c0_36, %c0_37] : memref<1x128xf32, #tpu.memory_space<vmem>>, vector<1x128xf32>
      %59 = arith.addf %57, %58 : vector<1x128xf32>
      %c0_38 = arith.constant 0 : index
      %c0_39 = arith.constant 0 : index
      %60 = vector.load %arg8[%c0_38, %c0_39] : memref<1x128xf32, #tpu.memory_space<vmem>>, vector<1x128xf32>
      tpu.vector_store %arg8[%c0_38, %c0_39], %59 {strides = array<i32>} : memref<1x128xf32, #tpu.memory_space<vmem>>, vector<1x128xf32>,
    } else {
    }
    return
  }
  func.func @transform_0(%arg0: i32) -> (i32, i32) {
    %c0_i32 = arith.constant 0 : i32
    %c0_i32_0 = arith.constant 0 : i32
    return %arg0, %c0_i32 : i32, i32
  }
  func.func @transform_1(%arg0: i32) -> (i32, i32) {
    %c0_i32 = arith.constant 0 : i32
    %c0_i32_0 = arith.constant 0 : i32
    %c0_i32_1 = arith.constant 0 : i32
    return %c0_i32, %c0_i32_0 : i32, i32
  }
  func.func @transform_2(%arg0: i32) -> (i32, i32) {
    %c0_i32 = arith.constant 0 : i32
    %c0_i32_0 = arith.constant 0 : i32
    %c0_i32_1 = arith.constant 0 : i32
    return %c0_i32, %c0_i32_0 : i32, i32
  }
  func.func @transform_3(%arg0: i32) -> (i32, i32) {
    %c0_i32 = arith.constant 0 : i32
    %c0_i32_0 = arith.constant 0 : i32
    %c0_i32_1 = arith.constant 0 : i32
    return %c0_i32, %c0_i32_0 : i32, i32
  }
  func.func @transform_4(%arg0: i32) -> (i32, i32) {
    %c0_i32 = arith.constant 0 : i32
    %c0_i32_0 = arith.constant 0 : i32
    %c0_i32_1 = arith.constant 0 : i32
    return %c0_i32, %c0_i32_0 : i32, i32
  }
  func.func @transform_5(%arg0: i32) -> (i32, i32) {
    %c0_i32 = arith.constant 0 : i32
    %c0_i32_0 = arith.constant 0 : i32
    %c0_i32_1 = arith.constant 0 : i32
    return %c0_i32, %c0_i32_0 : i32, i32
  }
  func.func @transform_6(%arg0: i32) -> (i32, i32) {
    %c0_i32 = arith.constant 0 : i32
    %c0_i32_0 = arith.constant 0 : i32
    %c0_i32_1 = arith.constant 0 : i32
    return %c0_i32, %c0_i32_0 : i32, i32
  }
  func.func @transform_7(%arg0: i32) -> (i32, i32) {
    %c0_i32 = arith.constant 0 : i32
    %c0_i32_0 = arith.constant 0 : i32
    %c0_i32_1 = arith.constant 0 : i32
    return %c0_i32, %c0_i32_0 : i32, i32
  }
}

</mosaic_0001>

<bundles_post_ra>
// kernel: tpu_custom_call.1
= control target key start
LH: loop header
LB: loop body
LE: loop exit
PB: predicated region body
PF: predicated region fallthrough
CT: control target
= control target key end

     0   :  { %12 = vsyncpa [#allocation5], 0  ;;  %s582_s0 = inlined_call_operand.vmem [shape: bf16[8,8], index: 0, kind: input, shape index: {}]   ;;  %s583_s1 = inlined_call_operand.vmem [shape: bf16[8,128], index: 1, kind: input, shape index: {}]   ;;  %s584_s2 = inlined_call_operand.vmem [shape: f32[8,1], index: 2, kind: input, shape index: {}]   ;;  %s585_s3 = inlined_call_operand.hbm [shape: bf16[128,128], index: 3, kind: input, shape index: {}]   ;;  %s586_s4 = inlined_call_operand.vmem [shape: f32[1,128], index: 4, kind: input, shape index: {}]   ;;  %s587_s5 = inlined_call_operand.hbm [shape: bf16[128,128], index: 5, kind: input, shape index: {}]   ;;  %s588_s6 = inlined_call_operand.vmem [shape: f32[1,128], index: 6, kind: input, shape index: {}]   ;;  %s589_s7 = inlined_call_operand.hbm [shape: f32[1,128], index: 7, kind: output, shape index: {}]  }
   0x1   :  { %13 = vsyncpa [#allocation8], 0 }
   0x2   :  { %14 = vsyncpa [#allocation6], 0  ;;  %s25_s26 = sshll.u32 %s585_s3, 4  ;;  %s507_s27 = smov [#allocation4]   ;;  %s26_s26 = int_to_ptr.hbm [resolvable:$true] %s25_s26 }
   0x3   :  { %s27_s28 = sshll.u32 %s507_s27, 4  ;;  %s40_s8 = sshll.u32 %s587_s5, 4  ;;  %s28_s28 = int_to_ptr.vmem [resolvable:$true] %s27_s28  ;;  %s41_s8 = int_to_ptr.hbm [resolvable:$true] %s40_s8 }
   0x4   :  { %s508_s9 = smov 64   ;;  %s509_s10 = smov 4  }
   0x5   :  { %33 = dma.hbm_to_vmem [thread:$0]  %s26_s26, 1024, %s28_s28, [#allocation5], %s508_s9, %s508_s9, %s509_s10  }
   0x6   :  { %s510_s11 = smov [#allocation7]  }
   0x7   :  { %s42_s12 = sshll.u32 %s510_s11, 4  ;;  %s43_s12 = int_to_ptr.vmem [resolvable:$true] %s42_s12 }
   0x8   :  { %48 = dma.hbm_to_vmem [thread:$0]  %s41_s8, 1024, %s43_s12, [#allocation8], %s508_s9, %s508_s9, %s509_s10  }
   0x9   :  { %501 = dma.done.wait [#allocation5], 1024  }
   0xa   :  { %502 = vsyncadd [#allocation5], 4294966272 }
   0xb   :  { %503 = dma.done.wait [#allocation8], 1024  }
   0xc   :  { %504 = vsyncadd [#allocation8], 4294966272  ;;  %v511_v0 = vmov 0   ;;  %v87_v1 = vld [vmem:[%s584_s2] sm:$0xff]  ;;  %vm69_vm0 = vcmask 64512   ;;  %vm100_vm1 = vcmask 1043456  }
   0xd   :  { %422 = vset.pattern.permute.xlu0 %v511_v0  ;;  %423 = vset.pattern.permute.xlu1 %v511_v0  ;;  %v67_v2 = vld [vmem:[%s582_s0] sm:$0xf]  ;;  %vm65_vm2 = vcmask 0   ;;  %v512_v12 = vmov 0.0   ;;  %v405_v13 = vld [vmem:[#allocation4 + $0x30] sm:$0xff]  ;;  %v404_v14 = vld [vmem:[#allocation4 + $0x28] sm:$0xff] }
   0xe   :  { %92 = vperm.xlu0 %422, %v87_v1   ;;  %v68_v3 = vunpack.c.l.bf16 %v67_v2  ;;  %v88_v5 = vld [vmem:[%s583_s1] sm:$0xf]  ;;  %64 = vst [vmem:[#allocation2] sm:$0x1] %v512_v12  ;;  %v401_v17 = vld [vmem:[#allocation4 + $0x10] sm:$0xff]  ;;  %v400_v18 = vld [vmem:[#allocation4 + $0x8] sm:$0xff] }
   0xf   :  { %v89_v6 = vunpack.c.l.bf16 %v88_v5  ;;  %v406_v11 = vld [vmem:[#allocation4 + $0x38] sm:$0xff]  ;;  %66 = vst.msk [vmem:[#allocation3] sm:$0x1] %vm65_vm2, %v512_v12  ;;  %v403_v15 = vld [vmem:[#allocation4 + $0x20] sm:$0xff]  ;;  %v413_v46 = vld [vmem:[#allocation7 + $0x30] sm:$0xff]  ;;  %s513_s17 = smov [#allocation9]  }
  0x10   :  { %v70_v4 = vsel %vm69_vm0, %v68_v3, 0.0  ;;  %187 = vmatpush.bf16.msra.mxu1 %v406_v11  ;;  %v402_v16 = vld [vmem:[#allocation4 + $0x18] sm:$0xff]  ;;  %v399_v30 = vld [vmem:[#allocation4] sm:$0xff]  ;;  %v412_v47 = vld [vmem:[#allocation7 + $0x28] sm:$0xff]  ;;  %s320_s18 = sshll.u32 %s513_s17, 4  ;;  %s322_s21 = sshll.u32 %s589_s7, 4  ;;  %s321_s18 = int_to_ptr.vmem [resolvable:$true] %s320_s18  ;;  %s323_s21 = int_to_ptr.hbm [resolvable:$true] %s322_s21 }
  0x11   :  { %v414_v45 = vld [vmem:[#allocation7 + $0x38] sm:$0xff]  ;;  %v411_v48 = vld [vmem:[#allocation7 + $0x20] sm:$0xff]  ;;  %v409_v50 = vld [vmem:[#allocation7 + $0x10] sm:$0xff] }
  0x12   :  { %301 = vmatpush.bf16.msra.mxu2 %v414_v45  ;;  %v410_v49 = vld [vmem:[#allocation7 + $0x18] sm:$0xff]  ;;  %v408_v51 = vld [vmem:[#allocation7 + $0x8] sm:$0xff]  ;;  %v407_v52 = vld [vmem:[#allocation7] sm:$0xff] }
  0x13   :  { %v424_v53 = vld [vmem:[%s586_s4] ss:$0 sm:$0xff] }
  0x14   :  { %188 = vmatpush.bf16.msra.mxu1 %v405_v13 }
  0x15   :  { %v202_v0 = vld [vmem:[#allocation2] sm:$0x1] }
  0x16   :  { %v211_v27 = vld [vmem:[#allocation3] sm:$0x1]  ;;  %302 = vmatpush.bf16.msra.mxu2 %v413_v46 }
  0x18   :  { %189 = vmatpush.bf16.msra.mxu1 %v404_v14 }
  0x1a   :  { %303 = vmatpush.bf16.msra.mxu2 %v412_v47 }
  0x1c   :  { %190 = vmatpush.bf16.msra.mxu1 %v403_v15 }
  0x1e   :  { %304 = vmatpush.bf16.msra.mxu2 %v411_v48 }
  0x20   :  { %191 = vmatpush.bf16.msra.mxu1 %v402_v16 }
  0x22   :  { %305 = vmatpush.bf16.msra.mxu2 %v410_v49 }
  0x24   :  { %192 = vmatpush.bf16.msra.mxu1 %v401_v17 }
  0x26   :  { %306 = vmatpush.bf16.msra.mxu2 %v409_v50 }
  0x28   :  { %193 = vmatpush.bf16.msra.mxu1 %v400_v18 }
  0x2a   :  { %307 = vmatpush.bf16.msra.mxu2 %v408_v51 }
  0x2c   :  { %194 = vmatpush.bf16.msra.mxu1 %v399_v30 }
  0x2e   :  { %308 = vmatpush.bf16.msra.mxu2 %v407_v52 }
  0x38   :  { %71 = vadd.xlane.f32.xlu0 %v70_v4 }
  0x80   :  { %v93_v7 = vpop.permute.xlu0 %92 }
  0x81   :  { %v95_v8 = vmul.f32 %v93_v7, %v89_v6 }
  0x83   :  { %v96_v9 = vpack.c.bf16 %v95_v8, %v95_v8  ;;  %v252_v8 = vld [vmem:[%s588_s6] sm:$0x1] }
  0x85   :  { %v102_v10 = vsel %vm100_vm1, %v96_v9, 0 }
  0x86   :  { %111 = vmatpush.bf16.msra.mxu0 %v102_v10 }
  0x89   :  { %334 = vmatmul.msk.bf16.vlgmr.msra.gmra.mxu0 %vm69_vm0, %v67_v2 }
  0xab   :  { %v72_v19 = vpop.xlane.xlu0 %71 }
  0xac   :  { %vm73_vm3 = vcmp.gt.f32.partialorder %v72_v19, 0.0  ;;  %425 = vrsqrt.f32 %v72_v19  ;;  %vm82_vm4 = vweird.f32 %v72_v19 }
  0xad   :  { %v333_v20 = vsel %vm73_vm3, 1.0, %v512_v12 }
  0xae   :  { %v212_v21 = vrot.slane %v333_v20, 4 }
  0xb0   :  { %v213_v22 = vadd.f32 %v333_v20, %v212_v21 }
  0xb2   :  { %v214_v23 = vrot.slane %v213_v22, 2  ;;  %v426_v32 = vpop.eup %425 }
  0xb3   :  { %v77_v34 = vmul.f32 %v426_v32, %v72_v19  ;;  %vm83_vm5 = vweird.f32 %v426_v32 }
  0xb4   :  { %v215_v24 = vadd.f32 %v214_v23, %v213_v22  ;;  %vm84_vm6 = vmor %vm82_vm4, %vm83_vm5 }
  0xb5   :  { %v78_v35 = vmul.f32 %v426_v32, %v77_v34 }
  0xb6   :  { %v216_v25 = vrot.slane %v215_v24, 1 }
  0xb7   :  { %v79_v36 = vmul.f32 0.5, %v78_v35 }
  0xb8   :  { %v217_v26 = vadd.f32 %v216_v25, %v215_v24 }
  0xb9   :  { %v80_v37 = vsub.f32 1.5, %v79_v36 }
  0xba   :  { %v218_v28 = vadd.f32 %v217_v26, %v211_v27 }
  0xbb   :  { %v81_v38 = vmul.f32 %v426_v32, %v80_v37 }
  0xbc   :  { %220 = vst.msk [vmem:[#allocation3] sm:$0x1] %vm65_vm2, %v218_v28 }
  0xbd   :  { %v85_v39 = vsel %vm84_vm6, %v426_v32, %v81_v38 }
  0xbe   :  { %v86_v40 = vsel %vm73_vm3, %v85_v39, 0.0 }
  0xc3   :  { %v224_v29 = vld [vmem:[#allocation3] sm:$0x1] }
  0xc4   :  { %v225_v31 = vmax.f32 %v224_v29, 1.0 }
  0xc6   :  { %427 = vrcp.f32 %v225_v31 }
  0xcc   :  { %v428_v33 = vpop.eup %427 }
  0xcd   :  { %230 = vperm.xlu1 %423, %v428_v33  }
 0x106   :  { %v113_v41 = vpop.f32.mrf.mxu0 }
 0x107   :  { %v117_v42 = vmul.f32 %v113_v41, %v86_v40 }
 0x109   :  { %v118_v43 = vpack.c.bf16 %v117_v42, %v117_v42 }
 0x10b   :  { %195 = vmatmul.bf16.vlgmr.msra.gmra.mxu1 %v118_v43 }
 0x10e   :  { %v115_v44 = vpop.f32.mrf.mxu0 }
 0x13f   :  { %v231_v3 = vpop.permute.xlu1 %230 }
 0x140   :  { %v233_v4 = vperm.slane %v231_v3, 0 }
 0x188   :  { %v196_v54 = vpop.f32.mrf.mxu1 }
 0x189   :  { %v197_v55 = vadd.f32 %v424_v53, %v196_v54 }
 0x18b   :  { %v200_v56 = vmax.f32 %v197_v55, 0.0 }
 0x18d   :  { %v201_v57 = vmul.f32 %v333_v20, %v200_v56 }
 0x18f   :  { %v203_v58 = vrot.slane %v201_v57, 4 }
 0x190   :  { %v198_v59 = vpop.f32.mrf.mxu1 }
 0x191   :  { %v204_v60 = vadd.f32 %v203_v58, %v201_v57 }
 0x193   :  { %v205_v61 = vrot.slane %v204_v60, 2 }
 0x195   :  { %v206_v62 = vadd.f32 %v205_v61, %v204_v60 }
 0x197   :  { %v207_v63 = vrot.slane %v206_v62, 1 }
 0x199   :  { %v208_v1 = vadd.f32 %v207_v63, %v206_v62 }
 0x19b   :  { %v209_v2 = vadd.f32 %v208_v1, %v202_v0 }
 0x19d   :  { %210 = vst [vmem:[#allocation2] sm:$0x1] %v209_v2 }
 0x1a4   :  { %v226_v5 = vld [vmem:[#allocation2] sm:$0x1] }
 0x1a5   :  { %v234_v6 = vmul.f32 %v233_v4, %v226_v5 }
 0x1a7   :  { %v235_v7 = vpack.c.bf16 %v234_v6, %v234_v6 }
 0x1a9   :  { %309 = vmatmul.bf16.vlgmr.msra.gmra.mxu2 %v235_v7 }
 0x22c   :  { %v310_v9 = vpop.f32.mrf.mxu2 }
 0x22d   :  { %v311_v10 = vadd.f32 %v310_v9, %v252_v8 }
 0x22f   :  { %314 = vst [vmem:[#allocation9] sm:$0x1] %v311_v10 }
 0x230   :  { %325 = dma.vmem_to_hbm [thread:$0]  %s321_s18, 16, %s323_s21, [#allocation6]  }
 0x234   :  { %v312_v11 = vpop.f32.mrf.mxu2 }
 0x235   :  { %505 = dma.done.wait [#allocation6], 16  }
 0x236   :  { %506 = vsyncadd [#allocation6], 4294967280 }
 0x237   :  { %330 = vsyncpa [#allocation5], 1 }
 0x238   :  { %331 = vsyncpa [#allocation8], 1 }
 0x239   :  { %332 = vsyncpa [#allocation6], 1 }

</bundles_post_ra>
